<compile_context>
chip_gen: v7x
topology: tpu7x:2x2x1
jax: 0.10.0
libtpu: 0.0.40
codegen_flags: <defaults>
</compile_context>

<pallas_src>
import numpy as np
import jax
import jax.numpy as jnp
from jax.experimental import pallas as pl
from jax.experimental.pallas import tpu as pltpu

TYPE_DICT = {"P": 1, "Z": 2, "S": 3, "Z2": 4, "S2": 5}   # 0 == leaf pass-through


def _elu(x):
    return jnp.where(x > 0, x, jnp.exp(jnp.minimum(x, 0.0)) - 1.0)


def _round_up(x, m):
    return ((x + m - 1) // m) * m


# --------------------------- pass 1: per slot-position transform ---------------------------
def node_kernel(g_ref, gate_ref, mask_ref, wbig_ref, h2_ref):
    # One native bf16 MXU pass; lane blocks of the result are [ P | Z | S | leaf ].
    h1 = jnp.dot(g_ref[...], wbig_ref[...], preferred_element_type=jnp.float32)
    e = _elu(h1)
    # ELU only on the Z/S lane blocks (P-path ELU happens post-pool, leaf is identity).
    # mask_ref is a precomputed (1, Cout) f32 0/1 row -> arithmetic blend, no per-step iota.
    mix = h1 + mask_ref[...] * (e - h1)
    # gate is exact 0/1 in bf16, so multiplying after the bf16 cast is exact.
    h2_ref[...] = mix.astype(jnp.bfloat16) * gate_ref[...]


# ------------------------------- pass 2: pooling + finalize -------------------------------
def pool_kernel(start_ref, poolt_ref, h2_ref, wcat_ref, wzs_ref, out_ref, acc_ref):
    n = pl.program_id(1)

    @pl.when(n == 0)
    def _init():
        acc_ref[...] = jnp.zeros_like(acc_ref)

    # Native bf16 pooling matmul, f32 accumulation (no upcast of the 0/1 one-hot).
    acc_ref[...] += jnp.dot(poolt_ref[...], h2_ref[...],
                            preferred_element_type=jnp.float32)

    @pl.when(n == pl.num_programs(1) - 1)
    def _finalize():
        a = acc_ref[...]
        # out(lanes 0:H) = elu(a_P)@Wpf + a_leaf + elu(a_Z@Wzf + a_S@Wsf); other lanes 0.
        r = jnp.concatenate([_elu(a), a], axis=1)                      # (tm, 2*Cout)
        out_ref[...] = (
            jnp.dot(r, wcat_ref[...], preferred_element_type=jnp.float32)
            + _elu(jnp.dot(a, wzs_ref[...], preferred_element_type=jnp.float32))
        ).astype(out_ref.dtype)


def ptree_layer_pallas(data_prev, order_matrix, pooling, type_mask, params,
                       tn=None, tm=None):
    """One permutation-tree layer. data_prev: (N_prev, H) jnp f32. Returns (M, H) f32."""
    k, N = order_matrix.shape
    H = data_prev.shape[1]
    om = np.array(order_matrix, dtype=np.int64) + 1          # 0 == empty slot
    pooling = np.array(pooling, dtype=np.int64)
    tmask = np.array(type_mask, dtype=np.int64)
    M = int(pooling.max()) + 1

    wbig = params["wbig"]
    Cin, Cout = wbig.shape                                   # both multiples of 128

    # ---- per-node gates on the ORIGINAL ordering (the all-empty quirk is rank-indexed) ----
    all_empty = np.all(om == 0, axis=0)                      # (N,)
    type_after = np.full((M,), -1, dtype=np.int64)           # global_max_pool(type_mask)
    np.maximum.at(type_after, pooling, tmask)

    def base_gate(tv):
        return (tmask == tv) & (type_after == tv)[pooling]

    def keep(tv):
        # reproduces masked_fill(..., all_empty[:num_type_nodes]) — indexed by *rank*
        is_t = tmask == tv
        rank = np.clip(np.cumsum(is_t) - 1, 0, N - 1)
        return is_t & (~all_empty[rank])

    gate_p = base_gate(TYPE_DICT["P"])
    gate_z = ((base_gate(TYPE_DICT["Z"]) & keep(TYPE_DICT["Z"]))
              | (base_gate(TYPE_DICT["Z2"]) & keep(TYPE_DICT["Z2"])))
    gate_s = ((base_gate(TYPE_DICT["S"]) & keep(TYPE_DICT["S"]))
              | (base_gate(TYPE_DICT["S2"]) & keep(TYPE_DICT["S2"])))
    gate_0 = base_gate(0)

    gate_wide = np.zeros((N, Cout), np.float32)              # lane-broadcast gates
    gate_wide[:, 0 * H:1 * H] = gate_p[:, None]
    gate_wide[:, 1 * H:2 * H] = gate_z[:, None]
    gate_wide[:, 2 * H:3 * H] = gate_s[:, None]
    gate_wide[:, 3 * H:4 * H] = gate_0[:, None]

    # ---- sort slot positions by pooling id so every M-tile reads a contiguous n range ----
    perm = np.argsort(pooling, kind="stable")
    om = om[:, perm]
    pooling = pooling[perm]
    gate_wide = gate_wide[perm]

    # ---- tiling (sweepable; defaults keep VMEM ~4 MiB -> safe on v5e/v6e/v7x) ----
    # tm cap 512 guarantees >= 2 "parallel" M-tiles (both v7x TensorCores) once M > 512.
    if tn is None:
        tn = min(1024, _round_up(max(N, 1), 128))
    if tm is None:
        tm = min(512, _round_up(max(M, 1), 16))
    Np = _round_up(N, tn)
    Mp = _round_up(M, tm)
    Mt, Nt = Mp // tm, Np // tn

    # ---- gather + lane-flatten (empty slots gather the all-zero row 0 of data_ext) ----
    data_ext = jnp.concatenate(
        [jnp.zeros((1, H), jnp.float32), data_prev.astype(jnp.float32)], axis=0)
    G = data_ext[jnp.asarray(om, dtype=jnp.int32)]           # (k, N, H)
    gflat = jnp.transpose(G, (1, 0, 2)).reshape(N, k * H)
    gflat = jnp.pad(gflat, ((0, Np - N), (0, Cin - k * H))).astype(jnp.bfloat16)
    gate_pad = jnp.asarray(np.pad(gate_wide, ((0, Np - N), (0, 0))), jnp.bfloat16)

    # -------------------- pass 1: h2 = gate * elu_mask(Gflat @ Wbig) --------------------
    h2 = pl.pallas_call(
        node_kernel,
        out_shape=jax.ShapeDtypeStruct((Np, Cout), jnp.bfloat16),
        grid_spec=pltpu.PrefetchScalarGridSpec(
            num_scalar_prefetch=0,
            grid=(Nt,),
            in_specs=[
                pl.BlockSpec((tn, Cin), lambda n: (n, 0)),      # Gflat (bf16)
                pl.BlockSpec((tn, Cout), lambda n: (n, 0)),     # gates (bf16, exact 0/1)
                pl.BlockSpec((1, Cout), lambda n: (0, 0)),      # ELU lane mask (f32)
                pl.BlockSpec((Cin, Cout), lambda n: (0, 0)),    # fused RHS [Wp|Wz*|Ws*|I]
            ],
            out_specs=pl.BlockSpec((tn, Cout), lambda n: (n, 0)),
        ),
        compiler_params=pltpu.CompilerParams(
            dimension_semantics=("parallel",),
            vmem_limit_bytes=32 * 1024 * 1024),
    )(gflat, gate_pad, params["elu_mask"], params["wbig"])

    # ---- pooling one-hot (transposed) + per-M-tile first overlapping n-tile (SMEM) ----
    poolt = np.zeros((Mp, Np), np.float32)
    poolt[pooling, np.arange(N)] = 1.0
    m_starts = np.arange(Mt) * tm
    row_lo = np.searchsorted(pooling, m_starts, side="left")
    row_hi = np.searchsorted(pooling, m_starts + tm - 1, side="right")
    lo_tile = row_lo // tn
    hi_tile = (row_hi + tn - 1) // tn
    cnt = np.where(row_hi > row_lo, hi_tile - lo_tile, 0)
    grid_n = max(int(cnt.max()), 1)                          # tiles actually streamed per M-tile
    start_blk = np.clip(np.minimum(lo_tile, Nt - grid_n), 0, None).astype(np.int32)
    # (tiles inside the window but outside an M-tile's true range have an all-zero poolt
    #  block -- sorted pooling guarantees it -- so they accumulate exactly zero.)

    # -------------------- pass 2: acc += poolt @ h2 ; fused finalize --------------------
    out = pl.pallas_call(
        pool_kernel,
        out_shape=jax.ShapeDtypeStruct((Mp, Cout), jnp.float32),
        grid_spec=pltpu.PrefetchScalarGridSpec(
            num_scalar_prefetch=1,                           # start_blk -> SMEM, used in index maps
            grid=(Mt, grid_n),
            in_specs=[
                pl.BlockSpec((tm, tn), lambda m, n, s: (m, s[m] + n)),     # poolt (bf16)
                pl.BlockSpec((tn, Cout), lambda m, n, s: (s[m] + n, 0)),   # h2 (bf16)
                pl.BlockSpec((2 * Cout, Cout), lambda m, n, s: (0, 0)),    # [Wpf ; leaf-I]
                pl.BlockSpec((Cout, Cout), lambda m, n, s: (0, 0)),        # [Wzf ; Wsf]
            ],
            out_specs=pl.BlockSpec((tm, Cout), lambda m, n, s: (m, 0)),
            scratch_shapes=[pltpu.VMEM((tm, Cout), jnp.float32)],
        ),
        compiler_params=pltpu.CompilerParams(
            dimension_semantics=("parallel", "arbitrary"),
            vmem_limit_bytes=32 * 1024 * 1024),
    )(jnp.asarray(start_blk), jnp.asarray(poolt, jnp.bfloat16), h2,
      params["wfin_cat"], params["wfin_zs"])

    return out[:M, :H]


def init_params(key, k, hidden_dim):
    """Deterministic init; torch.nn.Linear(H, H, bias=False) weight shape is (H_out, H_in)."""
    bound = 1.0 / np.sqrt(hidden_dim)

    def lin(kk):
        return jax.random.uniform(kk, (hidden_dim, hidden_dim), jnp.float32, -bound, bound)

    keys = jax.random.split(key, 2 * k + 4)
    wp, wpf = lin(keys[0]), lin(keys[1])
    wz = jnp.stack([lin(keys[2 + i]) for i in range(k)])
    wzf = lin(keys[2 + k])
    ws = jnp.stack([lin(keys[3 + k + i]) for i in range(k)])
    wsf = lin(keys[3 + 2 * k])

    H = hidden_dim
    Cin = max(128, _round_up(k * H, 128))      # fused contraction width
    Cout = max(128, _round_up(4 * H, 128))     # fused output / accumulator width
    # NOTE: on v6e/v7x a (128,128) RHS fills ~1/4 of the 256-wide MXU; if H grows, pad
    # Cin/Cout toward 256 (v5e's 128-wide MXUs are already fully fed).

    # Fused per-slot RHS (bf16): lane blocks [P | Z | S | leaf]; kernel computes x @ W.T per block.
    wbig = np.zeros((Cin, Cout), np.float32)
    wbig[0:H, 0:H] = np.asarray(wp).T
    for i in range(k):
        wbig[i * H:(i + 1) * H, 1 * H:2 * H] = np.asarray(wz[i]).T
        wbig[i * H:(i + 1) * H, 2 * H:3 * H] = np.asarray(ws[i]).T
    wbig[0:H, 3 * H:4 * H] = np.eye(H, dtype=np.float32)

    # ELU lane mask for pass 1 (ELU only on the Z / S lane blocks).
    elu_mask = np.zeros((1, Cout), np.float32)
    elu_mask[0, 1 * H:3 * H] = 1.0

    # Fused finalize weights (pass 2 epilogue); everything lands in lanes 0:H.
    #   [elu(acc) | acc] @ wfin_cat  ->  elu(acc_P) @ Wpf  +  acc_leaf
    #   elu(acc @ wfin_zs)           ->  elu(acc_Z @ Wzf + acc_S @ Wsf)
    wfin_cat = np.zeros((2 * Cout, Cout), np.float32)
    wfin_cat[0:H, 0:H] = np.asarray(wpf).T
    wfin_cat[Cout + 3 * H:Cout + 4 * H, 0:H] = np.eye(H, dtype=np.float32)
    wfin_zs = np.zeros((Cout, Cout), np.float32)
    wfin_zs[1 * H:2 * H, 0:H] = np.asarray(wzf).T
    wfin_zs[2 * H:3 * H, 0:H] = np.asarray(wsf).T

    return {
        "wp": wp, "wpf": wpf, "wz": wz, "wzf": wzf, "ws": ws, "wsf": wsf,
        "wbig": jnp.asarray(wbig, jnp.bfloat16),
        "elu_mask": jnp.asarray(elu_mask),
        "wfin_cat": jnp.asarray(wfin_cat),
        "wfin_zs": jnp.asarray(wfin_zs),
    }


# ---------------- pure numpy reference (mirrors the torch forward, incl. quirks) ----------------
def reference_layer(data_prev, order_matrix, pooling, type_mask, params, k, H):
    om = np.array(order_matrix, np.int64) + 1
    pooling = np.array(pooling, np.int64)
    tmask = np.array(type_mask, np.int64)
    data = np.concatenate([np.zeros((1, H), np.float32), np.asarray(data_prev, np.float32)], 0)
    M = int(pooling.max()) + 1
    type_after = np.full((M,), -1, np.int64)
    np.maximum.at(type_after, pooling, tmask)
    G = data[om]
    empty = om == 0
    out = np.zeros((M, H), np.float32)
    Wp, Wpf = np.asarray(params["wp"]), np.asarray(params["wpf"])
    Wz, Wzf = np.asarray(params["wz"]), np.asarray(params["wzf"])
    Ws, Wsf = np.asarray(params["ws"]), np.asarray(params["wsf"])

    def elu(x):
        return np.where(x > 0, x, np.exp(np.minimum(x, 0.0)) - 1.0)

    def segsum(x, seg, L):
        r = np.zeros((L, x.shape[1]), np.float32)
        np.add.at(r, seg, x)
        return r

    for name, val in TYPE_DICT.items():
        ntm = tmask == val
        ntma = type_after == val
        if not ntm.any():
            continue
        if name == "P":
            a = G[0][ntm] @ Wp.T
            seg = pooling[ntm]
            L = int(seg.max()) + 1
            a = segsum(a, seg, L)
            a = elu(a) @ Wpf.T
            out[ntma] = out[ntma] + a[ntma[:L]]
        else:
            Wl = Wz if name in ("Z", "Z2") else Ws
            Wf = Wzf if name in ("Z", "Z2") else Wsf
            stacked = np.stack([G[i][ntm] @ Wl[i].T for i in range(k)], 0)
            stacked = np.where(empty[:, ntm][:, :, None], 0.0, stacked)
            a = elu(stacked.sum(0)) @ Wf.T
            a = np.where(empty.all(0)[: a.shape[0]][:, None], 0.0, a)   # quirky slice, as in torch
            seg = pooling[ntm]
            L = int(seg.max()) + 1
            a = elu(segsum(a, seg, L))
            out[ntma] = out[ntma] + a[ntma[:L]]
    ntm = tmask == 0
    ntma = type_after == 0
    if ntm.any():
        out[ntma] = out[ntma] + G[0][ntm]
    return out


if __name__ == "__main__":
    H, K = 32, 3
    key = jax.random.PRNGKey(0)
    k_x, k_w, k_om0, k_om1 = jax.random.split(key, 4)

    # batch.x / batch.initial_map
    x = jax.random.normal(k_x, (12, H), jnp.float32)
    initial_map = np.array([3, 0, 7, 11, 5, 2, 9, 1, 10, 6])        # 10 leaf rows

    # layer 0: 14 slot positions -> 6 tree nodes (types P, Z, S, Z2, S2, leaf)
    pooling0 = np.array([0, 0, 0, 1, 1, 1, 2, 2, 2, 3, 3, 4, 4, 5])
    type0 = np.array([1, 1, 1, 2, 2, 2, 3, 3, 3, 4, 4, 5, 5, 0])
    om0 = np.array(jax.random.randint(k_om0, (K, 14), -1, 10))
    om0[:, 0] = -1          # all-empty column -> exercises the sliced all-empty quirk
    om0[:, 5] = -1
    om0[0, 13] = 4          # leaf pass-through picks a real row

    # layer 1: 5 slot positions over the 6 layer-0 outputs -> 2 tree nodes (S, P)
    pooling1 = np.array([0, 0, 0, 1, 1])
    type1 = np.array([3, 3, 3, 1, 1])
    om1 = np.array(jax.random.randint(k_om1, (K, 5), -1, 6))

    params = init_params(k_w, K, H)
    layers = [(om0, pooling0, type0), (om1, pooling1, type1)]

    data = x[jnp.asarray(initial_map)]
    data_ref = np.asarray(data)
    for om, poolv, tmv in layers:
        data = ptree_layer_pallas(data, om, poolv, tmv, params)
        data_ref = reference_layer(data_ref, om, poolv, tmv, params, K, H)

    data = jax.block_until_ready(data)
    # bf16 MXU inputs (Gflat / Wbig / h2) with f32 accumulation vs. a pure-f32 numpy
    # reference over two layers: tolerance is set for bf16 rounding, not f32 agreement.
    np.testing.assert_allclose(np.asarray(data), data_ref, rtol=5e-2, atol=5e-2)
    print("KERNEL_OK")
</pallas_src>

<mosaic_0001>
module attributes {stable_mosaic.version = 11 : i64} {
  func.func @node_kernel(%arg0: i32, %arg1: memref<128x128xbf16, #tpu.memory_space<vmem>>, %arg2: memref<128x128xbf16, #tpu.memory_space<vmem>>, %arg3: memref<1x128xf32, #tpu.memory_space<vmem>>, %arg4: memref<128x128xbf16, #tpu.memory_space<vmem>>, %arg5: memref<128x128xbf16, #tpu.memory_space<vmem>>) attributes {dimension_semantics = [#tpu.dimension_semantics<parallel>], iteration_bounds = array<i64: 1>, scalar_prefetch = 0 : i64, scratch_operands = 0 : i64, tpu.core_type = #tpu.core_type<tc>, window_params = [{transform_indices = @transform_0, window_bounds = array<i64: 128, 128>}, {transform_indices = @transform_1, window_bounds = array<i64: 128, 128>}, {pipeline_mode = #tpu.pipeline_mode<synchronous>, transform_indices = @transform_2, window_bounds = array<i64: 1, 128>}, {pipeline_mode = #tpu.pipeline_mode<synchronous>, transform_indices = @transform_3, window_bounds = array<i64: 128, 128>}, {transform_indices = @transform_4, window_bounds = array<i64: 128, 128>}]} {
    %c0 = arith.constant 0 : index
    %c0_0 = arith.constant 0 : index
    %0 = vector.load %arg1[%c0, %c0_0] : memref<128x128xbf16, #tpu.memory_space<vmem>>, vector<128x128xbf16>
    %c0_1 = arith.constant 0 : index
    %c0_2 = arith.constant 0 : index
    %1 = vector.load %arg4[%c0_1, %c0_2] : memref<128x128xbf16, #tpu.memory_space<vmem>>, vector<128x128xbf16>
    %cst = arith.constant dense<0.000000e+00> : vector<128x128xf32>
    %2 = tpu.matmul %0, %1, %cst {dimension_numbers = #tpu.dot_dimension_numbers<[1], [0], [0], [1], [0, 0, 1, 1], [], []>} : vector<128x128xbf16>, vector<128x128xbf16>, vector<128x128xf32> -> vector<128x128xf32>
    %cst_3 = arith.constant 0.000000e+00 : f32
    %3 = vector.broadcast %cst_3 : f32 to vector<128x128xf32>
    %4 = arith.cmpf ogt, %2, %3 : vector<128x128xf32>
    %cst_4 = arith.constant 0.000000e+00 : f32
    %5 = vector.broadcast %cst_4 : f32 to vector<128x128xf32>
    %6 = arith.minimumf %2, %5 : vector<128x128xf32>
    %7 = math.exp %6 : vector<128x128xf32>
    %cst_5 = arith.constant 1.000000e+00 : f32
    %8 = vector.broadcast %cst_5 : f32 to vector<128x128xf32>
    %9 = arith.subf %7, %8 : vector<128x128xf32>
    %10 = arith.select %4, %2, %9 : vector<128x128xi1>, vector<128x128xf32>
    %c0_6 = arith.constant 0 : index
    %c0_7 = arith.constant 0 : index
    %11 = vector.load %arg3[%c0_6, %c0_7] : memref<1x128xf32, #tpu.memory_space<vmem>>, vector<1x128xf32>
    %12 = arith.subf %10, %2 : vector<128x128xf32>
    %13 = vector.broadcast %11 : vector<1x128xf32> to vector<128x128xf32>
    %14 = arith.mulf %13, %12 : vector<128x128xf32>
    %15 = arith.addf %2, %14 : vector<128x128xf32>
    %16 = arith.truncf %15 : vector<128x128xf32> to vector<128x128xbf16>
    %c0_8 = arith.constant 0 : index
    %c0_9 = arith.constant 0 : index
    %17 = vector.load %arg2[%c0_8, %c0_9] : memref<128x128xbf16, #tpu.memory_space<vmem>>, vector<128x128xbf16>
    %18 = arith.mulf %16, %17 : vector<128x128xbf16>
    %c0_10 = arith.constant 0 : index
    %c0_11 = arith.constant 0 : index
    %19 = vector.load %arg5[%c0_10, %c0_11] : memref<128x128xbf16, #tpu.memory_space<vmem>>, vector<128x128xbf16>
    tpu.vector_store %arg5[%c0_10, %c0_11], %18 {strides = array<i32>} : memref<128x128xbf16, #tpu.memory_space<vmem>>, vector<128x128xbf16>,
    return
  }
  func.func @transform_0(%arg0: i32) -> (i32, i32) {
    %c0_i32 = arith.constant 0 : i32
    %c0_i32_0 = arith.constant 0 : i32
    return %arg0, %c0_i32 : i32, i32
  }
  func.func @transform_1(%arg0: i32) -> (i32, i32) {
    %c0_i32 = arith.constant 0 : i32
    %c0_i32_0 = arith.constant 0 : i32
    return %arg0, %c0_i32 : i32, i32
  }
  func.func @transform_2(%arg0: i32) -> (i32, i32) {
    %c0_i32 = arith.constant 0 : i32
    %c0_i32_0 = arith.constant 0 : i32
    %c0_i32_1 = arith.constant 0 : i32
    return %c0_i32, %c0_i32_0 : i32, i32
  }
  func.func @transform_3(%arg0: i32) -> (i32, i32) {
    %c0_i32 = arith.constant 0 : i32
    %c0_i32_0 = arith.constant 0 : i32
    %c0_i32_1 = arith.constant 0 : i32
    return %c0_i32, %c0_i32_0 : i32, i32
  }
  func.func @transform_4(%arg0: i32) -> (i32, i32) {
    %c0_i32 = arith.constant 0 : i32
    %c0_i32_0 = arith.constant 0 : i32
    return %arg0, %c0_i32 : i32, i32
  }
}

</mosaic_0001>

<bundles_post_ra>
// kernel: tpu_custom_call.1
= control target key start
LH: loop header
LB: loop body
LE: loop exit
PB: predicated region body
PF: predicated region fallthrough
CT: control target
= control target key end

     0   :  { %9 = vsyncpa [#allocation3], 0  ;;  %s1144_s0 = inlined_call_operand.hbm [shape: bf16[128,128], index: 0, kind: input, shape index: {}]   ;;  %s1145_s1 = inlined_call_operand.hbm [shape: bf16[128,128], index: 1, kind: input, shape index: {}]   ;;  %s1146_s2 = inlined_call_operand.vmem [shape: f32[1,128], index: 2, kind: input, shape index: {}]   ;;  %s1147_s3 = inlined_call_operand.hbm [shape: bf16[128,128], index: 3, kind: input, shape index: {}]   ;;  %s1148_s4 = inlined_call_operand.hbm [shape: bf16[128,128], index: 4, kind: output, shape index: {}]  }
   0x1   :  { %10 = vsyncpa [#allocation6], 0 }
   0x2   :  { %11 = vsyncpa [#allocation4], 0  ;;  %s883_s15 = smov [#allocation5]   ;;  %s884_s17 = smov [#allocation2]  }
   0x3   :  { %s29_s16 = sshll.u32 %s883_s15, 4  ;;  %s17_s18 = sshll.u32 %s884_s17, 4  ;;  %s30_s16 = int_to_ptr.vmem [resolvable:$true] %s29_s16  ;;  %s914_s18 = int_to_ptr.vmem [resolvable:$true] %s17_s18 }
   0x4   :  { %s789_s21 = scalar_lea.hbm %s1145_s1, 1024 }
   0x5   :  { %p790_p0 = scmp.ne.s32.totalorder %s1145_s1, %s789_s21  ;;  %p793_p1 = scmp.lt.u32.totalorder %s789_s21, %s1145_s1 }
   0x7   :  { %p795_p2 = pnand %p793_p1, %p790_p0 }
   0x9   :  { %798 = shalt.err (!%p795_p2)
}
   0xa   :  { %s799_s26 = scalar_lea.vmem %s30_s16, 1024  ;;  %p804_p4 = scmp.lt.s32.totalorder %s30_s16, %s30_s16 }
   0xb   :  { %p800_p3 = scmp.ne.s32.totalorder %s30_s16, %s799_s26  ;;  %p805_p5 = scmp.lt.s32.totalorder %s799_s26, %s799_s26 }
   0xd   :  { %p806_p6 = por %p805_p5, %p804_p4 }
   0xf   :  { %p807_p7 = pnand %p806_p6, %p800_p3 }
  0x11   :  { %810 = shalt.err (!%p807_p7)
}
  0x12   :  { %s885_s27 = smov 64   ;;  %s886_s28 = smov 4  }
  0x13   :  { %35 = dma.hbm_to_vmem [thread:$0]  %s1145_s1, 1024, %s30_s16, [#allocation6], %s885_s27, %s885_s27, %s886_s28  }
  0x14   :  { %s811_s7 = scalar_lea.hbm %s1144_s0, 1024 }
  0x15   :  { %p812_p8 = scmp.ne.s32.totalorder %s1144_s0, %s811_s7  ;;  %p815_p9 = scmp.lt.u32.totalorder %s811_s7, %s1144_s0 }
  0x17   :  { %p817_p10 = pnand %p815_p9, %p812_p8 }
  0x19   :  { %820 = shalt.err (!%p817_p10)
}
  0x1a   :  { %s821_s12 = scalar_lea.vmem %s914_s18, 1024  ;;  %p826_p12 = scmp.lt.s32.totalorder %s914_s18, %s914_s18 }
  0x1b   :  { %p822_p11 = scmp.ne.s32.totalorder %s914_s18, %s821_s12  ;;  %p827_p13 = scmp.lt.s32.totalorder %s821_s12, %s821_s12 }
  0x1d   :  { %p828_p0 = por %p827_p13, %p826_p12 }
  0x1f   :  { %p829_p1 = pnand %p828_p0, %p822_p11 }
  0x21   :  { %832 = shalt.err (!%p829_p1)
}
  0x22   :  { %23 = dma.hbm_to_vmem [thread:$0]  %s1144_s0, 1024, %s914_s18, [#allocation3], %s885_s27, %s885_s27, %s886_s28  }
  0x23   :  { %s887_s14 = smov [#allocation7]   ;;  %s833_s19 = scalar_lea.hbm %s1147_s3, 1024 }
  0x24   :  { %s43_s15 = sshll.u32 %s887_s14, 4  ;;  %p834_p2 = scmp.ne.s32.totalorder %s1147_s3, %s833_s19  ;;  %s44_s15 = int_to_ptr.vmem [resolvable:$true] %s43_s15 }
  0x25   :  { %p837_p3 = scmp.lt.u32.totalorder %s833_s19, %s1147_s3 }
  0x27   :  { %p839_p4 = pnand %p837_p3, %p834_p2 }
  0x29   :  { %842 = shalt.err (!%p839_p4)
}
  0x2a   :  { %s843_s24 = scalar_lea.vmem %s44_s15, 1024  ;;  %p848_p6 = scmp.lt.s32.totalorder %s44_s15, %s44_s15 }
  0x2b   :  { %p844_p5 = scmp.ne.s32.totalorder %s44_s15, %s843_s24  ;;  %p849_p7 = scmp.lt.s32.totalorder %s843_s24, %s843_s24 }
  0x2d   :  { %p850_p8 = por %p849_p7, %p848_p6 }
  0x2f   :  { %p851_p9 = pnand %p850_p8, %p844_p5 }
  0x31   :  { %854 = shalt.err (!%p851_p9)
}
  0x32   :  { %49 = dma.hbm_to_vmem [thread:$0]  %s1147_s3, 1024, %s44_s15, [#allocation6], %s885_s27, %s885_s27, %s886_s28  }
  0x33   :  { %877 = dma.done.wait [#allocation3], 1024  }
  0x34   :  { %878 = vsyncadd [#allocation3], 4294966272 }
  0x35   :  { %879 = dma.done.wait [#allocation6], 2048  }
  0x36   :  { %880 = vsyncadd [#allocation6], 4294965248  ;;  %v733_v0 = vld [vmem:[#allocation7] sm:$0xff]   ;;  %v734_v1 = vld [vmem:[#allocation7 + $0x8] sm:$0xff]  }
  0x37   :  { %679 = vmatprep.subr.bf16.mxu0 %v733_v0  ;;  %711 = vmatprep.subr.bf16.mxu1 %v733_v0  ;;  %v735_v2 = vld [vmem:[#allocation7 + $0x10] sm:$0xff]   ;;  %v736_v3 = vld [vmem:[#allocation7 + $0x18] sm:$0xff]   ;;  %v741_v4 = vld [vmem:[#allocation2] sm:$0xff]  }
  0x38   :  { %680 = vmatpush3.bf16.msra.mxu0 %v733_v0  ;;  %719 = vmatpush3.bf16.msra.mxu1 %v733_v0  ;;  %v742_v5 = vld [vmem:[#allocation2 + $0x20] sm:$0xff]   ;;  %v738_v7 = vld [vmem:[#allocation7 + $0x28] sm:$0xff]   ;;  %v739_v8 = vld [vmem:[#allocation7 + $0x30] sm:$0xff]  }
  0x39   :  { %681 = vmatprep.subr.bf16.mxu0 %v734_v1  ;;  %712 = vmatprep.subr.bf16.mxu1 %v734_v1  ;;  %v737_v6 = vld [vmem:[#allocation7 + $0x20] sm:$0xff]   ;;  %v740_v9 = vld [vmem:[#allocation7 + $0x38] sm:$0xff]   ;;  %v743_v10 = vld [vmem:[#allocation2 + $0x8] sm:$0xff]  }
  0x3a   :  { %695 = vmatprep.mubr.bf16.mxu0 %v741_v4  ;;  %703 = vmatprep.mubr.bf16.mxu1 %v742_v5  ;;  %v744_v11 = vld [vmem:[#allocation2 + $0x28] sm:$0xff]   ;;  %v745_v12 = vld [vmem:[#allocation2 + $0x10] sm:$0xff]   ;;  %v747_v14 = vld [vmem:[#allocation2 + $0x18] sm:$0xff]  }
  0x3b   :  { %v746_v13 = vld [vmem:[#allocation2 + $0x30] sm:$0xff]   ;;  %v748_v15 = vld [vmem:[#allocation2 + $0x38] sm:$0xff]  }
  0x3c   :  { %682 = vmatpush3.bf16.msra.mxu0 %v734_v1  ;;  %720 = vmatpush3.bf16.msra.mxu1 %v734_v1 }
  0x3d   :  { %683 = vmatprep.subr.bf16.mxu0 %v735_v2  ;;  %713 = vmatprep.subr.bf16.mxu1 %v735_v2 }
  0x40   :  { %684 = vmatpush3.bf16.msra.mxu0 %v735_v2  ;;  %721 = vmatpush3.bf16.msra.mxu1 %v735_v2 }
  0x41   :  { %685 = vmatprep.subr.bf16.mxu0 %v736_v3  ;;  %714 = vmatprep.subr.bf16.mxu1 %v736_v3 }
  0x44   :  { %686 = vmatpush3.bf16.msra.mxu0 %v736_v3  ;;  %722 = vmatpush3.bf16.msra.mxu1 %v736_v3 }
  0x45   :  { %687 = vmatprep.subr.bf16.mxu0 %v737_v6  ;;  %715 = vmatprep.subr.bf16.mxu1 %v737_v6 }
  0x48   :  { %688 = vmatpush3.bf16.msra.mxu0 %v737_v6  ;;  %723 = vmatpush3.bf16.msra.mxu1 %v737_v6 }
  0x49   :  { %689 = vmatprep.subr.bf16.mxu0 %v738_v7  ;;  %716 = vmatprep.subr.bf16.mxu1 %v738_v7 }
  0x4c   :  { %690 = vmatpush3.bf16.msra.mxu0 %v738_v7  ;;  %724 = vmatpush3.bf16.msra.mxu1 %v738_v7  ;;  %v1028_v7 = vld [vmem:[%s1146_s2] ss:$0 sm:$0xff]  ;;  %s888_s2 = smov [#allocation8]  }
  0x4d   :  { %691 = vmatprep.subr.bf16.mxu0 %v739_v8  ;;  %717 = vmatprep.subr.bf16.mxu1 %v739_v8  ;;  %s593_s26 = sshll.u32 %s888_s2, 4  ;;  %s594_s26 = int_to_ptr.vmem [resolvable:$true] %s593_s26 }
  0x4e   :  { %s855_s29 = scalar_lea.vmem %s594_s26, 1024  ;;  %p860_p11 = scmp.lt.s32.totalorder %s594_s26, %s594_s26 }
  0x4f   :  { %p856_p10 = scmp.ne.s32.totalorder %s594_s26, %s855_s29  ;;  %p861_p12 = scmp.lt.s32.totalorder %s855_s29, %s855_s29 }
  0x50   :  { %692 = vmatpush3.bf16.msra.mxu0 %v739_v8  ;;  %725 = vmatpush3.bf16.msra.mxu1 %v739_v8 }
  0x51   :  { %693 = vmatprep.subr.bf16.mxu0 %v740_v9  ;;  %718 = vmatprep.subr.bf16.mxu1 %v740_v9  ;;  %p862_p13 = por %p861_p12, %p860_p11 }
  0x53   :  { %p863_p0 = pnand %p862_p13, %p856_p10 }
  0x54   :  { %694 = vmatpush3.bf16.msra.mxu0 %v740_v9  ;;  %726 = vmatpush3.bf16.msra.mxu1 %v740_v9 }
  0x57   :  { %696 = vmatmul.mubr.bf16.vlgmr.msra.gmra.mrb[0].mxu0 %v743_v10  ;;  %704 = vmatmul.mubr.bf16.vlgmr.msra.gmra.mrb[0].mxu1 %v744_v11 }
  0x58   :  { %699 = vmatprep.mubr.bf16.mxu0 %v745_v12  ;;  %707 = vmatprep.mubr.bf16.mxu1 %v746_v13 }
  0x5f   :  { %700 = vmatmul.mubr.bf16.gmra.mrb[4].mxu0 %v747_v14  ;;  %708 = vmatmul.mubr.bf16.gmra.mrb[4].mxu1 %v748_v15 }
 0x12a   :  { %v966_v16 = vpop.f32.mrb[0].mxu0  ;;  %v968_v17 = vpop.f32.mrb[0].mxu1 }
 0x12b   :  { %v303_v18 = vmin.f32 %v966_v16, 0.0  ;;  %v311_v19 = vmin.f32 %v968_v17, 0.0  ;;  %v972_v20 = vpop.f32.mrb[1].mxu0  ;;  %v974_v21 = vpop.f32.mrb[1].mxu1  ;;  %vm287_vm0 = vcmp.gt.f32.partialorder %v966_v16, 0.0  ;;  %vm295_vm1 = vcmp.gt.f32.partialorder %v968_v17, 0.0 }
 0x12c   :  { %v301_v22 = vmin.f32 %v972_v20, 0.0  ;;  %v309_v23 = vmin.f32 %v974_v21, 0.0  ;;  %v978_v24 = vpop.f32.mrb[2].mxu0  ;;  %v980_v25 = vpop.f32.mrb[2].mxu1  ;;  %vm285_vm2 = vcmp.gt.f32.partialorder %v972_v20, 0.0  ;;  %vm293_vm3 = vcmp.gt.f32.partialorder %v974_v21, 0.0 }
 0x12d   :  { %v321_v26 = vmul.f32 1.442695, %v303_v18  ;;  %v337_v27 = vmul.f32 1.442695, %v311_v19  ;;  %v304_v28 = vmin.f32 %v978_v24, 0.0  ;;  %v312_v31 = vmin.f32 %v980_v25, 0.0 }
 0x12e   :  { %v317_v29 = vmul.f32 1.442695, %v301_v22  ;;  %v333_v30 = vmul.f32 1.442695, %v309_v23  ;;  %v984_v33 = vpop.f32.mrb[3].mxu0  ;;  %v986_v34 = vpop.f32.mrb[3].mxu1 }
 0x12f   :  { %757 = vpow2.f32 %v321_v26  ;;  %v323_v32 = vmul.f32 1.442695, %v304_v28  ;;  %v339_v35 = vmul.f32 1.442695, %v312_v31  ;;  %v302_v36 = vmin.f32 %v984_v33, 0.0 }
 0x130   :  { %759 = vpow2.f32 %v337_v27  ;;  %v310_v37 = vmin.f32 %v986_v34, 0.0  ;;  %vm288_vm4 = vcmp.gt.f32.partialorder %v978_v24, 0.0  ;;  %vm296_vm5 = vcmp.gt.f32.partialorder %v980_v25, 0.0 }
 0x131   :  { %761 = vpow2.f32 %v317_v29  ;;  %v319_v38 = vmul.f32 1.442695, %v302_v36  ;;  %vm286_vm6 = vcmp.gt.f32.partialorder %v984_v33, 0.0  ;;  %vm294_vm7 = vcmp.gt.f32.partialorder %v986_v34, 0.0 }
 0x132   :  { %763 = vpow2.f32 %v333_v30  ;;  %v990_v39 = vpop.f32.mrb[4].mxu0  ;;  %v992_v40 = vpop.f32.mrb[4].mxu1  ;;  %v335_v41 = vmul.f32 1.442695, %v310_v37 }
 0x133   :  { %765 = vpow2.f32 %v323_v32  ;;  %v307_v42 = vmin.f32 %v990_v39, 0.0  ;;  %v995_v43 = vpop.f32.mrb[5].mxu0  ;;  %v997_v44 = vpop.f32.mrb[5].mxu1  ;;  %v315_v45 = vmin.f32 %v992_v40, 0.0  ;;  %vm291_vm8 = vcmp.gt.f32.partialorder %v990_v39, 0.0 }
 0x134   :  { %767 = vpow2.f32 %v339_v35  ;;  %v1000_v46 = vpop.f32.mrb[6].mxu0  ;;  %v1002_v47 = vpop.f32.mrb[6].mxu1  ;;  %v305_v49 = vmin.f32 %v995_v43, 0.0  ;;  %v313_v53 = vmin.f32 %v997_v44, 0.0  ;;  %vm299_vm9 = vcmp.gt.f32.partialorder %v992_v40, 0.0 }
 0x135   :  { %769 = vpow2.f32 %v319_v38  ;;  %v329_v48 = vmul.f32 1.442695, %v307_v42  ;;  %v1005_v50 = vpop.f32.mrb[7].mxu0  ;;  %v1007_v51 = vpop.f32.mrb[7].mxu1  ;;  %v345_v52 = vmul.f32 1.442695, %v315_v45 }
 0x136   :  { %771 = vpow2.f32 %v335_v41  ;;  %v325_v54 = vmul.f32 1.442695, %v305_v49  ;;  %v308_v55 = vmin.f32 %v1000_v46, 0.0  ;;  %v341_v56 = vmul.f32 1.442695, %v313_v53 }
 0x137   :  { %773 = vpow2.f32 %v329_v48  ;;  %v316_v57 = vmin.f32 %v1002_v47, 0.0  ;;  %v306_v60 = vmin.f32 %v1005_v50, 0.0  ;;  %v314_v63 = vmin.f32 %v1007_v51, 0.0 }
 0x138   :  { %775 = vpow2.f32 %v345_v52  ;;  %v331_v59 = vmul.f32 1.442695, %v308_v55  ;;  %vm289_vm10 = vcmp.gt.f32.partialorder %v995_v43, 0.0  ;;  %vm297_vm11 = vcmp.gt.f32.partialorder %v997_v44, 0.0 }
 0x139   :  { %v758_v58 = vpop.eup %757  ;;  %777 = vpow2.f32 %v325_v54  ;;  %v347_v2 = vmul.f32 1.442695, %v316_v57  ;;  %v327_v11 = vmul.f32 1.442695, %v306_v60  ;;  %v343_v18 = vmul.f32 1.442695, %v314_v63 }
 0x13a   :  { %v760_v61 = vpop.eup %759  ;;  %v624_v62 = vadd.f32 -1.0, %v758_v58  ;;  %779 = vpow2.f32 %v341_v56  ;;  %vm292_vm12 = vcmp.gt.f32.partialorder %v1000_v46, 0.0  ;;  %vm300_vm13 = vcmp.gt.f32.partialorder %v1002_v47, 0.0 }
 0x13b   :  { %v762_v0 = vpop.eup %761  ;;  %v632_v1 = vadd.f32 -1.0, %v760_v61  ;;  %781 = vpow2.f32 %v331_v59  ;;  %v749_v61 = vld [vmem:[#allocation5 + $0x8] sm:$0xff]   ;;  %vm290_vm14 = vcmp.gt.f32.partialorder %v1005_v50, 0.0  ;;  %vm298_vm15 = vcmp.gt.f32.partialorder %v1007_v51, 0.0 }
 0x13c   :  { %v764_v3 = vpop.eup %763  ;;  %v367_v4 = vsel %vm287_vm0, %v966_v16, %v624_v62  ;;  %v622_v5 = vadd.f32 -1.0, %v762_v0  ;;  %783 = vpow2.f32 %v347_v2 }
 0x13d   :  { %v766_v6 = vpop.eup %765  ;;  %v384_v8 = vsub.f32 %v367_v4, %v966_v16  ;;  %v375_v9 = vsel %vm295_vm1, %v968_v17, %v632_v1  ;;  %v630_v10 = vadd.f32 -1.0, %v764_v3  ;;  %785 = vpow2.f32 %v327_v11  ;;  %v750_v1 = vld [vmem:[#allocation5 + $0x28] sm:$0xff]  }
 0x13e   :  { %v768_v12 = vpop.eup %767  ;;  %v392_v13 = vsub.f32 %v375_v9, %v968_v17  ;;  %v365_v14 = vsel %vm285_vm2, %v972_v20, %v622_v5  ;;  %v625_v15 = vadd.f32 -1.0, %v766_v6  ;;  %787 = vpow2.f32 %v343_v18  ;;  %v751_v6 = vld [vmem:[#allocation5] sm:$0xff]  }
 0x13f   :  { %v770_v19 = vpop.eup %769  ;;  %v382_v22 = vsub.f32 %v365_v14, %v972_v20  ;;  %v373_v23 = vsel %vm293_vm3, %v974_v21, %v630_v10  ;;  %v633_v26 = vadd.f32 -1.0, %v768_v12  ;;  %v406_v28 = vmul.f32 %v1028_v7, %v384_v8 }
 0x140   :  { %v772_v27 = vpop.eup %771  ;;  %v414_v29 = vmul.f32 %v1028_v7, %v392_v13  ;;  %v368_v30 = vsel %vm288_vm4, %v978_v24, %v625_v15  ;;  %v623_v31 = vadd.f32 -1.0, %v770_v19  ;;  %v390_v35 = vsub.f32 %v373_v23, %v974_v21  ;;  %v752_v15 = vld [vmem:[#allocation5 + $0x20] sm:$0xff]  }
 0x141   :  { %v774_v32 = vpop.eup %773  ;;  %v385_v36 = vsub.f32 %v368_v30, %v978_v24  ;;  %v376_v37 = vsel %vm296_vm5, %v980_v25, %v633_v26  ;;  %v404_v48 = vmul.f32 %v1028_v7, %v382_v22  ;;  %v631_v53 = vadd.f32 -1.0, %v772_v27 }
 0x142   :  { %v776_v38 = vpop.eup %775  ;;  %v393_v41 = vsub.f32 %v376_v37, %v980_v25  ;;  %v366_v42 = vsel %vm286_vm6, %v984_v33, %v623_v31  ;;  %v422_v54 = vadd.f32 %v966_v16, %v406_v28  ;;  %v430_v55 = vadd.f32 %v968_v17, %v414_v29 }
 0x143   :  { %v778_v45 = vpop.eup %777  ;;  %v407_v49 = vmul.f32 %v1028_v7, %v385_v36  ;;  %v383_v52 = vsub.f32 %v366_v42, %v984_v33  ;;  %v628_v57 = vadd.f32 -1.0, %v774_v32  ;;  %v412_v59 = vmul.f32 %v1028_v7, %v390_v35 }
 0x144   :  { %v415_v56 = vmul.f32 %v1028_v7, %v393_v41  ;;  %v780_v58 = vpop.eup %779  ;;  %v374_v63 = vsel %vm294_vm7, %v986_v34, %v631_v53  ;;  %v636_v2 = vadd.f32 -1.0, %v776_v38  ;;  %v626_v3 = vadd.f32 -1.0, %v778_v45 }
 0x145   :  { %v423_v60 = vadd.f32 %v978_v24, %v407_v49  ;;  %v405_v62 = vmul.f32 %v1028_v7, %v383_v52  ;;  %v782_v0 = vpop.eup %781  ;;  %v391_v17 = vsub.f32 %v374_v63, %v986_v34  ;;  %v420_v4 = vadd.f32 %v404_v48, %v972_v20 }
 0x146   :  { %v431_v16 = vadd.f32 %v980_v25, %v415_v56  ;;  %v371_v25 = vsel %vm291_vm8, %v990_v39, %v628_v57  ;;  %v634_v10 = vadd.f32 -1.0, %v780_v58  ;;  %v784_v11 = vpop.eup %783  ;;  %v428_v12 = vadd.f32 %v412_v59, %v974_v21 }
 0x147   :  { %v437_v5 = vpack.c.bf16 %v423_v60, %v422_v54  ;;  %v421_v24 = vadd.f32 %v405_v62, %v984_v33  ;;  %v413_v9 = vmul.f32 %v1028_v7, %v391_v17  ;;  %v379_v18 = vsel %vm299_vm9, %v992_v40, %v636_v2  ;;  %v786_v22 = vpop.eup %785 }
 0x148   :  { %v441_v8 = vpack.c.bf16 %v431_v16, %v430_v55  ;;  %v369_v19 = vsel %vm289_vm10, %v995_v43, %v626_v3  ;;  %v388_v27 = vsub.f32 %v371_v25, %v990_v39  ;;  %v788_v28 = vpop.eup %787  ;;  %v396_v36 = vsub.f32 %v379_v18, %v992_v40 }
 0x149   :  { %v509_v20 = vmul.bf16 %v749_v61, %v437_v5  ;;  %v436_v13 = vpack.c.bf16 %v421_v24, %v420_v4  ;;  %v429_v14 = vadd.f32 %v413_v9, %v986_v34  ;;  %v377_v34 = vsel %vm297_vm11, %v997_v44, %v634_v10  ;;  %v753_v24 = vld [vmem:[#allocation5 + $0x18] sm:$0xff]  }
 0x14a   :  { %v513_v33 = vmul.bf16 %v750_v1, %v441_v8  ;;  %v386_v37 = vsub.f32 %v369_v19, %v995_v43  ;;  %v629_v41 = vadd.f32 -1.0, %v782_v0  ;;  %v637_v42 = vadd.f32 -1.0, %v784_v11  ;;  %v754_v8 = vld [vmem:[#allocation5 + $0x38] sm:$0xff]   ;;  %v755_v11 = vld [vmem:[#allocation5 + $0x10] sm:$0xff]  }
 0x14b   :  { %v649_v23 = vcombine.low %v509_v20, %v509_v20  ;;  %v650_v26 = vcombine.high %v509_v20, %v509_v20  ;;  %v508_v21 = vmul.bf16 %v751_v6, %v436_v13  ;;  %v440_v31 = vpack.c.bf16 %v429_v14, %v428_v12 }
 0x14c   :  { %v657_v29 = vcombine.low %v513_v33, %v513_v33  ;;  %v658_v30 = vcombine.high %v513_v33, %v513_v33  ;;  %v627_v45 = vadd.f32 -1.0, %v786_v22  ;;  %v410_v48 = vmul.f32 %v1028_v7, %v388_v27  ;;  %v756_v33 = vld [vmem:[#allocation5 + $0x30] sm:$0xff]  }
 0x14d   :  { %574 = vst [vmem:[#allocation8 + $0x8] sm:$0xf] %v649_v23  ;;  %575 = vst [vmem:[#allocation8 + $0xc] sm:$0xf] %v650_v26  ;;  %v647_v32 = vcombine.low %v508_v21, %v508_v21  ;;  %v648_v35 = vcombine.high %v508_v21, %v508_v21  ;;  %v512_v38 = vmul.bf16 %v752_v15, %v440_v31  ;;  %v635_v52 = vadd.f32 -1.0, %v788_v28 }
 0x14e   :  { %582 = vst [vmem:[#allocation8 + $0x28] sm:$0xf] %v657_v29  ;;  %583 = vst [vmem:[#allocation8 + $0x2c] sm:$0xf] %v658_v30  ;;  %v394_v49 = vsub.f32 %v377_v34, %v997_v44  ;;  %v372_v55 = vsel %vm292_vm12, %v1000_v46, %v629_v41  ;;  %v380_v56 = vsel %vm300_vm13, %v1002_v47, %v637_v42 }
 0x14f   :  { %572 = vst [vmem:[#allocation8] sm:$0xf] %v647_v32  ;;  %573 = vst [vmem:[#allocation8 + $0x4] sm:$0xf] %v648_v35  ;;  %v655_v53 = vcombine.low %v512_v38, %v512_v38  ;;  %v656_v54 = vcombine.high %v512_v38, %v512_v38  ;;  %v418_v57 = vmul.f32 %v1028_v7, %v396_v36 }
 0x150   :  { %v389_v58 = vsub.f32 %v372_v55, %v1000_v46  ;;  %v397_v59 = vsub.f32 %v380_v56, %v1002_v47  ;;  %v370_v60 = vsel %vm290_vm14, %v1005_v50, %v627_v45  ;;  %v408_v61 = vmul.f32 %v1028_v7, %v386_v37 }
 0x151   :  { %580 = vst [vmem:[#allocation8 + $0x20] sm:$0xf] %v655_v53  ;;  %581 = vst [vmem:[#allocation8 + $0x24] sm:$0xf] %v656_v54  ;;  %v387_v62 = vsub.f32 %v370_v60, %v1005_v50  ;;  %v378_v63 = vsel %vm298_vm15, %v1007_v51, %v635_v52  ;;  %v416_v0 = vmul.f32 %v1028_v7, %v394_v49 }
 0x152   :  { %v411_v16 = vmul.f32 %v1028_v7, %v389_v58  ;;  %v419_v1 = vmul.f32 %v1028_v7, %v397_v59  ;;  %v395_v17 = vsub.f32 %v378_v63, %v1007_v51  ;;  %v426_v2 = vadd.f32 %v990_v39, %v410_v48 }
 0x153   :  { %v409_v3 = vmul.f32 %v1028_v7, %v387_v62  ;;  %v434_v4 = vadd.f32 %v992_v40, %v418_v57  ;;  %v424_v25 = vadd.f32 %v408_v61, %v995_v43  ;;  %v432_v12 = vadd.f32 %v416_v0, %v997_v44 }
 0x154   :  { %v427_v5 = vadd.f32 %v1000_v46, %v411_v16  ;;  %v435_v6 = vadd.f32 %v1002_v47, %v419_v1  ;;  %v417_v9 = vmul.f32 %v1028_v7, %v395_v17 }
 0x155   :  { %v425_v10 = vadd.f32 %v409_v3, %v1005_v50 }
 0x156   :  { %v439_v39 = vpack.c.bf16 %v427_v5, %v426_v2  ;;  %v443_v20 = vpack.c.bf16 %v435_v6, %v434_v4  ;;  %v433_v13 = vadd.f32 %v417_v9, %v1007_v51 }
 0x157   :  { %v438_v40 = vpack.c.bf16 %v425_v10, %v424_v25 }
 0x158   :  { %v511_v46 = vmul.bf16 %v753_v24, %v439_v39  ;;  %v515_v14 = vmul.bf16 %v754_v8, %v443_v20  ;;  %v442_v15 = vpack.c.bf16 %v433_v13, %v432_v12 }
 0x159   :  { %v510_v47 = vmul.bf16 %v755_v11, %v438_v40 }
 0x15a   :  { %v653_v18 = vcombine.low %v511_v46, %v511_v46  ;;  %v654_v19 = vcombine.high %v511_v46, %v511_v46  ;;  %v661_v7 = vcombine.low %v515_v14, %v515_v14  ;;  %v662_v22 = vcombine.high %v515_v14, %v515_v14 }
 0x15b   :  { %v651_v43 = vcombine.low %v510_v47, %v510_v47  ;;  %v652_v50 = vcombine.high %v510_v47, %v510_v47  ;;  %v514_v23 = vmul.bf16 %v756_v33, %v442_v15 }
 0x15c   :  { %578 = vst [vmem:[#allocation8 + $0x18] sm:$0xf] %v653_v18  ;;  %579 = vst [vmem:[#allocation8 + $0x1c] sm:$0xf] %v654_v19 }
 0x15d   :  { %586 = vst [vmem:[#allocation8 + $0x38] sm:$0xf] %v661_v7  ;;  %587 = vst [vmem:[#allocation8 + $0x3c] sm:$0xf] %v662_v22  ;;  %v659_v44 = vcombine.low %v514_v23, %v514_v23  ;;  %v660_v51 = vcombine.high %v514_v23, %v514_v23 }
 0x15e   :  { %576 = vst [vmem:[#allocation8 + $0x10] sm:$0xf] %v651_v43  ;;  %577 = vst [vmem:[#allocation8 + $0x14] sm:$0xf] %v652_v50 }
 0x15f   :  { %584 = vst [vmem:[#allocation8 + $0x30] sm:$0xf] %v659_v44  ;;  %585 = vst [vmem:[#allocation8 + $0x34] sm:$0xf] %v660_v51 }
 0x160   :  { %866 = shalt.err (!%p863_p0)
}
 0x161   :  { %s867_s6 = scalar_lea.hbm %s1148_s4, 1024 }
 0x162   :  { %p868_p1 = scmp.ne.s32.totalorder %s1148_s4, %s867_s6  ;;  %p871_p2 = scmp.lt.u32.totalorder %s867_s6, %s1148_s4 }
 0x164   :  { %p873_p3 = pnand %p871_p2, %p868_p1 }
 0x166   :  { %876 = shalt.err (!%p873_p3)
}
 0x167   :  { %599 = dma.vmem_to_hbm [thread:$0]  %s594_s26, 1024, %s1148_s4, [#allocation4], %s885_s27, %s885_s27, %s886_s28  }
 0x168   :  { %881 = dma.done.wait [#allocation4], 1024  }
 0x169   :  { %882 = vsyncadd [#allocation4], 4294966272 }
 0x16a   :  { %603 = vsyncpa [#allocation3], 1 }
 0x16b   :  { %604 = vsyncpa [#allocation6], 1 }
 0x16c   :  { %605 = vsyncpa [#allocation4], 1 }

</bundles_post_ra>
